<compile_context>
chip_gen: v7x
topology: tpu7x:2x2x1
jax: 0.10.0
libtpu: 0.0.40
codegen_flags: <defaults>
</compile_context>

<pallas_src>
import jax
import jax.numpy as jnp
from jax import lax
from jax.experimental import pallas as pl
from jax.experimental.pallas import tpu as pltpu

_EPS = 1e-12                       # F.normalize default eps
_BLOCK_BYTE_TARGET = 2 * 1024 * 1024   # ~2 MiB of x per grid step
_VMEM_LIMIT_BYTES = 32 * 1024 * 1024   # safe on v5e/v6e/v7x


def _choose_tiles(b, c, l, itemsize):
    """Pick (TB, TL) so the x block is ~_BLOCK_BYTE_TARGET bytes."""
    if l < 128:
        tl = l                                   # full-L (equals array dim -> legal)
    else:
        max_tl = (l // 128) * 128                # keep TL a multiple of 128, TL <= L
        budget_tl = max(128, (_BLOCK_BYTE_TARGET // max(c * itemsize, 1)) // 128 * 128)
        tl = min(max_tl, budget_tl)
    tb = 1
    block_bytes = c * tl * itemsize
    if block_bytes < _BLOCK_BYTE_TARGET:         # small C: also block over batch
        tb = min(b, max(1, _BLOCK_BYTE_TARGET // max(block_bytes, 1)))
    return tb, tl


def _rmsnorm_kernel(x_ref, g_ref, o_ref):
    # x_ref: (TB, C, TL) native dtype; g_ref: (1, C, 1) f32 (already * sqrt(C)).
    x = x_ref[...].astype(jnp.float32)
    ssq = jnp.sum(x * x, axis=1, keepdims=True)              # (TB, 1, TL)
    inv = lax.rsqrt(jnp.maximum(ssq, _EPS * _EPS))           # == 1 / max(||x||, eps)
    o_ref[...] = (x * inv * g_ref[...]).astype(o_ref.dtype)  # single lane-dense store


def _rmsnorm_linear_kernel(x_ref, g_ref, w_ref, o_ref):
    # x_ref: (1, C, TL); g_ref: (1, C, 1); w_ref: (O, C); o_ref: (1, O, TL)
    x = x_ref[0].astype(jnp.float32)                         # (C, TL)
    ssq = jnp.sum(x * x, axis=0, keepdims=True)              # (1, TL)
    inv = lax.rsqrt(jnp.maximum(ssq, _EPS * _EPS))
    y = x * inv * g_ref[0]                                   # (C, TL)
    out = jnp.dot(w_ref[...].astype(jnp.float32), y,
                  preferred_element_type=jnp.float32)        # (O, TL) on the MXU
    o_ref[...] = out[None].astype(o_ref.dtype)


def rmsnorm(x, g):
    """x: (B, C, L), g: (1, C, 1) -> (B, C, L) in x.dtype."""
    b, c, l = x.shape
    g_scaled = g.reshape(1, c, 1).astype(jnp.float32) * (c ** 0.5)
    tb, tl = _choose_tiles(b, c, l, jnp.dtype(x.dtype).itemsize)
    grid = (pl.cdiv(b, tb), pl.cdiv(l, tl))

    return pl.pallas_call(
        _rmsnorm_kernel,
        out_shape=jax.ShapeDtypeStruct((b, c, l), x.dtype),
        grid_spec=pltpu.PrefetchScalarGridSpec(
            num_scalar_prefetch=0,
            grid=grid,
            in_specs=[
                pl.BlockSpec((tb, c, tl), lambda i, j: (i, 0, j)),
                pl.BlockSpec((1, c, 1), lambda i, j: (0, 0, 0)),
            ],
            out_specs=pl.BlockSpec((tb, c, tl), lambda i, j: (i, 0, j)),
        ),
        compiler_params=pltpu.CompilerParams(
            dimension_semantics=("parallel", "parallel"),
            vmem_limit_bytes=_VMEM_LIMIT_BYTES),
    )(x, g_scaled)


def rmsnorm_linear(x, g, w):
    """Fused PreNorm for a channel-mixing linear fn: einsum('oc,bcl->bol', w, norm(x))."""
    b, c, l = x.shape
    o = w.shape[0]
    g_scaled = g.reshape(1, c, 1).astype(jnp.float32) * (c ** 0.5)
    _, tl = _choose_tiles(1, c, l, jnp.dtype(x.dtype).itemsize)
    grid = (b, pl.cdiv(l, tl))

    return pl.pallas_call(
        _rmsnorm_linear_kernel,
        out_shape=jax.ShapeDtypeStruct((b, o, l), x.dtype),
        grid_spec=pltpu.PrefetchScalarGridSpec(
            num_scalar_prefetch=0,
            grid=grid,
            in_specs=[
                pl.BlockSpec((1, c, tl), lambda i, j: (i, 0, j)),
                pl.BlockSpec((1, c, 1), lambda i, j: (0, 0, 0)),
                pl.BlockSpec((o, c), lambda i, j: (0, 0)),
            ],
            out_specs=pl.BlockSpec((1, o, tl), lambda i, j: (i, 0, j)),
        ),
        compiler_params=pltpu.CompilerParams(
            dimension_semantics=("parallel", "parallel"),
            vmem_limit_bytes=_VMEM_LIMIT_BYTES),
    )(x, g_scaled, w)


def pre_norm(x, g, fn=lambda y: y):
    """Generic PreNorm.forward: fn(RMSNorm(x)); fn runs as plain JAX outside."""
    return fn(rmsnorm(x, g))


def _rmsnorm_reference(x, g):
    x = x.astype(jnp.float32)
    c = x.shape[1]
    norm = jnp.sqrt(jnp.sum(x * x, axis=1, keepdims=True))
    return x / jnp.maximum(norm, _EPS) * g.reshape(1, c, 1) * (c ** 0.5)


if __name__ == "__main__":
    key = jax.random.PRNGKey(0)
    k_x, k_w = jax.random.split(key)

    batch, dim, seq = 2, 8, 16                       # x: (B, C, L), g: (1, C, 1)
    x = jax.random.normal(k_x, (batch, dim, seq), dtype=jnp.float32)
    g = jnp.ones((1, dim, 1), dtype=jnp.float32)     # nn.Parameter(torch.ones)

    # PreNorm's wrapped `fn`: a channel-mixing linear stand-in (fuseable path).
    w_fn = jax.random.normal(k_w, (dim, dim), dtype=jnp.float32) * 0.1
    fn = lambda y: jnp.einsum("oc,bcl->bol", w_fn, y)

    # 1) Fused path (norm + linear fn inside one kernel).
    out_fused = jax.block_until_ready(rmsnorm_linear(x, g, w_fn))
    ref = fn(_rmsnorm_reference(x, g))
    assert out_fused.shape == (batch, dim, seq), out_fused.shape
    assert jnp.allclose(out_fused, ref, atol=1e-5, rtol=1e-5), "fused mismatch"

    # 2) Generic path (norm kernel, fn applied outside).
    out_generic = jax.block_until_ready(pre_norm(x, g, fn))
    assert jnp.allclose(out_generic, ref, atol=1e-5, rtol=1e-5), "generic mismatch"

    # 3) Native bf16 I/O (no wrapper astype; f32 math inside the kernel).
    x_bf16 = x.astype(jnp.bfloat16)
    out_bf16 = jax.block_until_ready(rmsnorm(x_bf16, g))
    ref_bf16 = _rmsnorm_reference(x_bf16, g)
    assert out_bf16.dtype == jnp.bfloat16
    assert jnp.allclose(out_bf16.astype(jnp.float32), ref_bf16,
                        atol=5e-2, rtol=5e-2), "bf16 mismatch"

    print("KERNEL_OK")
</pallas_src>

<mosaic_0001>
module attributes {stable_mosaic.version = 11 : i64} {
  func.func @_rmsnorm_linear_kernel(%arg0: i32, %arg1: i32, %arg2: memref<1x8x16xf32, #tpu.memory_space<vmem>>, %arg3: memref<1x8x1xf32, #tpu.memory_space<vmem>>, %arg4: memref<8x8xf32, #tpu.memory_space<vmem>>, %arg5: memref<1x8x16xf32, #tpu.memory_space<vmem>>) attributes {dimension_semantics = [#tpu.dimension_semantics<parallel>, #tpu.dimension_semantics<parallel>], iteration_bounds = array<i64: 2, 1>, scalar_prefetch = 0 : i64, scratch_operands = 0 : i64, tpu.core_type = #tpu.core_type<tc>, window_params = [{transform_indices = @transform_0, window_bounds = array<i64: 1, 8, 16>}, {pipeline_mode = #tpu.pipeline_mode<synchronous>, transform_indices = @transform_1, window_bounds = array<i64: 1, 8, 1>}, {pipeline_mode = #tpu.pipeline_mode<synchronous>, transform_indices = @transform_2, window_bounds = array<i64: 8, 8>}, {transform_indices = @transform_3, window_bounds = array<i64: 1, 8, 16>}]} {
    %c0 = arith.constant 0 : index
    %c0_0 = arith.constant 0 : index
    %c0_1 = arith.constant 0 : index
    %0 = vector.load %arg2[%c0, %c0_0, %c0_1] : memref<1x8x16xf32, #tpu.memory_space<vmem>>, vector<1x8x16xf32>
    %1 = vector.shape_cast %0 : vector<1x8x16xf32> to vector<8x16xf32>
    %2 = arith.mulf %1, %1 : vector<8x16xf32>
    %cst = arith.constant dense<0.000000e+00> : vector<16xf32>
    %3 = vector.multi_reduction <add>, %2, %cst [0] : vector<8x16xf32> to vector<16xf32>
    %4 = vector.shape_cast %3 : vector<16xf32> to vector<1x16xf32>
    %cst_2 = arith.constant 1.000000e-24 : f32
    %5 = vector.broadcast %cst_2 : f32 to vector<1x16xf32>
    %6 = arith.maximumf %4, %5 : vector<1x16xf32>
    %7 = math.rsqrt %6 : vector<1x16xf32>
    %8 = vector.broadcast %7 : vector<1x16xf32> to vector<8x16xf32>
    %9 = arith.mulf %1, %8 : vector<8x16xf32>
    %c0_3 = arith.constant 0 : index
    %c0_4 = arith.constant 0 : index
    %c0_5 = arith.constant 0 : index
    %10 = vector.load %arg3[%c0_3, %c0_4, %c0_5] : memref<1x8x1xf32, #tpu.memory_space<vmem>>, vector<1x8x1xf32>
    %11 = vector.shape_cast %10 : vector<1x8x1xf32> to vector<8x1xf32>
    %12 = vector.broadcast %11 : vector<8x1xf32> to vector<8x16xf32>
    %13 = arith.mulf %9, %12 : vector<8x16xf32>
    %c0_6 = arith.constant 0 : index
    %c0_7 = arith.constant 0 : index
    %14 = vector.load %arg4[%c0_6, %c0_7] : memref<8x8xf32, #tpu.memory_space<vmem>>, vector<8x8xf32>
    %cst_8 = arith.constant dense<0.000000e+00> : vector<8x16xf32>
    %15 = tpu.matmul %14, %13, %cst_8 {dimension_numbers = #tpu.dot_dimension_numbers<[1], [0], [0], [1], [0, 0, 1, 1], [], []>} : vector<8x8xf32>, vector<8x16xf32>, vector<8x16xf32> -> vector<8x16xf32>
    %16 = vector.shape_cast %15 : vector<8x16xf32> to vector<1x8x16xf32>
    %c0_9 = arith.constant 0 : index
    %c0_10 = arith.constant 0 : index
    %c0_11 = arith.constant 0 : index
    %17 = vector.load %arg5[%c0_9, %c0_10, %c0_11] : memref<1x8x16xf32, #tpu.memory_space<vmem>>, vector<1x8x16xf32>
    tpu.vector_store %arg5[%c0_9, %c0_10, %c0_11], %16 {strides = array<i32>} : memref<1x8x16xf32, #tpu.memory_space<vmem>>, vector<1x8x16xf32>,
    return
  }
  func.func @transform_0(%arg0: i32, %arg1: i32) -> (i32, i32, i32) {
    %c0_i32 = arith.constant 0 : i32
    %c0_i32_0 = arith.constant 0 : i32
    return %arg0, %c0_i32, %arg1 : i32, i32, i32
  }
  func.func @transform_1(%arg0: i32, %arg1: i32) -> (i32, i32, i32) {
    %c0_i32 = arith.constant 0 : i32
    %c0_i32_0 = arith.constant 0 : i32
    %c0_i32_1 = arith.constant 0 : i32
    %c0_i32_2 = arith.constant 0 : i32
    return %c0_i32, %c0_i32_0, %c0_i32_1 : i32, i32, i32
  }
  func.func @transform_2(%arg0: i32, %arg1: i32) -> (i32, i32) {
    %c0_i32 = arith.constant 0 : i32
    %c0_i32_0 = arith.constant 0 : i32
    %c0_i32_1 = arith.constant 0 : i32
    return %c0_i32, %c0_i32_0 : i32, i32
  }
  func.func @transform_3(%arg0: i32, %arg1: i32) -> (i32, i32, i32) {
    %c0_i32 = arith.constant 0 : i32
    %c0_i32_0 = arith.constant 0 : i32
    return %arg0, %c0_i32, %arg1 : i32, i32, i32
  }
}

</mosaic_0001>

<bundles_post_ra>
// kernel: tpu_custom_call.1
= control target key start
LH: loop header
LB: loop body
LE: loop exit
PB: predicated region body
PF: predicated region fallthrough
CT: control target
= control target key end

     0   :  { %8 = vsyncpa [#allocation3], 0  ;;  %s806_s0 = inlined_call_operand.hbm [shape: f32[2,8,16], index: 0, kind: input, shape index: {}]   ;;  %s807_s1 = inlined_call_operand.vmem [shape: f32[1,8,1], index: 1, kind: input, shape index: {}]   ;;  %s808_s2 = inlined_call_operand.vmem [shape: f32[8,8], index: 2, kind: input, shape index: {}]   ;;  %s809_s3 = inlined_call_operand.hbm [shape: f32[2,8,16], index: 3, kind: output, shape index: {}]  }
   0x1   :  { %10 = vsyncpa [#allocation3 + $0x1], 0 }
   0x2   :  { %11 = vsyncpa [#allocation4], 0 }
   0x3   :  { %13 = vsyncpa [#allocation4 + $0x1], 0  ;;  %s622_s12 = smov 0   ;;  %s624_s13 = smov 0  }
   0x4   :  { %s626_s14 = smov 0   ;;  %s628_s15 = smov 0  }
   0x5   :  { %s630_s16 = smov 0   ;;  %s632_s17 = smov 0  }
   0x6 LB: > { %s394_s18 = sadd.s32 4294967295, %s595_s17   ;;  %s395_s19 = sadd.s32 4294967294, %s595_s17   ;;  %s595_s17 = sphi %s632_s17, %s19_s17   ;;  %s591_s16 = sphi %s630_s16, %s825_s16   ;;  %s587_s15 = sphi %s628_s15, %s824_s15   ;;  %s583_s14 = sphi %s626_s14, %s823_s14   ;;  %s579_s13 = sphi %s624_s13, %s822_s13   ;;  %s575_s12 = sphi %s622_s12, %s821_s12  }
   0x7   : > { %s31_s20 = sadd.s32 1, %s591_s16  ;;  %s40_s21 = sadd.s32 1, %s583_s14 }
   0x8   : > { %p33_p0 = scmp.ge.s32.totalorder %s31_s20, 2  ;;  %p47_p1 = scmp.ne.s32.totalorder %s583_s14, %s579_s13 }
   0x9   : > { %p48_p2 = scmp.eq.s32.totalorder %s595_s17, 0  ;;  %p53_p3 = scmp.ne.s32.totalorder %s579_s13, %s575_s12 }
   0xa   : > { %s827_s20 = smov (%p33_p0, %s31_s20), 0  ;;  %p54_p5 = scmp.eq.s32.totalorder %s394_s18, 0 }
   0xb   : > { %p663_p4 = por %p48_p2, %p47_p1  ;;  %s35_s23 = ssub.s32 %s591_s16, %s827_s20 }
   0xc   : > { %p121_p6 = scmp.eq.s32.totalorder %s394_s18, 1  ;;  %p38_p7 = scmp.eq.s32.totalorder %s35_s23, 0 }
   0xd   : > { %p669_p8 = por %p54_p5, %p53_p3  ;;  %p127_p10 = scmp.eq.s32.totalorder %s395_s19, 1 }
   0xe   : > { %p673_p9 = por %p121_p6, %p47_p1  ;;  %p427_p13 = scmp.lt.s32.totalorder %s595_s17, 2 }
   0xf   : > { %s678_s26 = scalar_select %p38_p7, %s583_s14, %s40_s21  }
  0x10   : > { %s813_s25 = scalar_select %p673_p9, 1, 0 }
  0x11   : > { %p680_p11 = por %p127_p10, %p53_p3  ;;  %s153_s28 = sand.u32 1, %s583_s14  }
  0x12   : > { %s398_s29 = sshll.u32 %s153_s28, 3  ;;  %s399_s30 = sshll.u32 %s591_s16, 7 }
  0x13   : > { %s814_s27 = scalar_select %p680_p11, 1, 0 }
  0x14   : > { %s691_s6 = scalar_lea.hbm %s806_s0, %s399_s30  ;;  %s157_s7 = scalar_lea.vmem [#allocation2], %s398_s29 }
  0x15   : > { %s165_s8 = sshll.u32 %s157_s7, 4  ;;  %p697_p0 = pnand %p427_p13, %p663_p4  ;;  %s693_s8 = int_to_ptr.vmem [resolvable:$true] %s165_s8 }
  0x16   : > { %s154_s10 = scalar_lea.sflag [#allocation3], %s153_s28  ;;  %s483_s11 = scalar_lea.hbm %s691_s6, 128 }
  0x17   : > { %p484_p3 = scmp.ne.s32.totalorder %s691_s6, %s483_s11  ;;  %p485_p5 = pneg %p697_p0 }
  0x18   : > { %s488_s21 = scalar_lea.hbm %s806_s0, 256  ;;  %p489_p4 = scmp.lt.u32.totalorder %s691_s6, %s806_s0 }
  0x19   : > { %p486_p6 = pnand %p485_p5, %p484_p3  ;;  %p490_p10 = scmp.lt.u32.totalorder %s488_s21, %s483_s11 }
  0x1a   : > { %p492_p12 = scmp.lt.u32.totalorder %s483_s11, %s691_s6 }
  0x1b   : > { %p487_p7 = pneg %p486_p6  ;;  %p491_p13 = por %p490_p10, %p489_p4 }
  0x1d   : > { %p493_p1 = por %p492_p12, %p491_p13 }
  0x1f   : > { %p494_p2 = pnand %p493_p1, %p487_p7 }
  0x21   : > { %497 = shalt.err (!%p494_p2)
}
  0x22   : > { %s498_s28 = scalar_lea.vmem %s693_s8, 128  ;;  %s597_s29 = smov [#allocation2]  }
  0x23   : > { %p499_p3 = scmp.ne.s32.totalorder %s693_s8, %s498_s28  ;;  %s503_s30 = sshll.u32 %s597_s29, 4  ;;  %s504_s30 = int_to_ptr.vmem [resolvable:$false] %s503_s30 }
  0x24   : > { %s505_s4 = scalar_lea.vmem %s504_s30, 256  ;;  %p506_p9 = scmp.lt.s32.totalorder %s693_s8, %s504_s30 }
  0x25   : > { %p501_p6 = pnand %p499_p3, %p485_p5  ;;  %p507_p4 = scmp.lt.s32.totalorder %s505_s4, %s498_s28 }
  0x27   : > { %p502_p11 = pneg %p501_p6  ;;  %p508_p10 = por %p507_p4, %p506_p9 }
  0x29   : > { %p509_p12 = pnand %p508_p10, %p502_p11 }
  0x2b   : > { %512 = shalt.err (!%p509_p12)
}
  0x2c   : > { %422 = dma.hbm_to_vmem [thread:$0]  (!%p697_p0), %s691_s6, 128, %s693_s8, %s154_s10  }
  0x2d   : > { %p816_p1 = scmp.lt.s32.totalorder %s595_s17, 3  ;;  %p817_p2 = scmp.ge.s32.totalorder %s595_s17, 1 }
  0x2f   : > { %p171_p5 = pnand %p817_p2, %p816_p1 }
  0x30   : > { %s733_s5 = sand.u32 (!%p171_p5), 1, %s579_s13  }
  0x31   : > { %174 = sbr.rel (%p171_p5) target bundleno = 416 (0x1a0), region = 32  ;;  %s401_s7 = sshll.u32 (!%p171_p5), %s733_s5, 3 }
  0x32   : > { %s177_s11 = scalar_lea.sflag (!%p171_p5), [#allocation3], %s733_s5  ;;  %s180_s9 = scalar_lea.vmem (!%p171_p5), [#allocation2], %s401_s7 }
  0x38   : > { %566 = dma.done.wait (%p669_p8), %s177_s11, 128  }
  0x39   : > { %568 = vsyncadd (%p669_p8), %s177_s11, 4294967168  ;;  %v598_v0 = vmov 0   ;;  %v216_v1 = vld [vmem:[%s807_s1] sm:$0xff]  ;;  %v599_v2 = vmov 0.0   ;;  %vm600_vm0 = vmmov 0   ;;  %vm205_vm1 = vcmask 130048  }
  0x3a   : > { %480 = vset.pattern.permute.xlu0 %v598_v0  ;;  %410 = vmatprep.subr.mxu0 %v599_v2  ;;  %v203_v3 = vld [vmem:[%s180_s9] sm:$0xff]  ;;  %vm224_vm2 = vcmask 64512   ;;  %s405_s18 = sshll.u32 %s587_s15, 7  ;;  %s202_s19 = scalar_lea.vmem [#allocation5], %s401_s7 }
  0x3b   : > { %219 = vperm.xlu0 %480, %v216_v1   ;;  %412 = vmatprep.mubr.msk.f32.mxu0 %vm600_vm0, %v599_v2  ;;  %v204_v4 = vmul.f32 %v203_v3, %v203_v3  ;;  %v223_v17 = vld [vmem:[%s808_s2] sm:$0xff]  ;;  %s314_s21 = sshll.u32 %s202_s19, 4  ;;  %s756_s28 = scalar_lea.hbm %s809_s3, %s405_s18  ;;  %s758_s21 = int_to_ptr.vmem [resolvable:$true] %s314_s21 }
  0x3c   : > { %s300_s29 = scalar_lea.sflag [#allocation4], %s733_s5  ;;  %s513_s30 = scalar_lea.vmem %s758_s21, 128 }
  0x3d   : > { %v206_v5 = vsel %vm205_vm1, %v204_v4, 0.0  ;;  %p514_p8 = scmp.ne.s32.totalorder %s758_s21, %s513_s30  ;;  %p818_p9 = scmp.ne.s32.totalorder %s813_s25, 0 }
  0x3e   : > { %v207_v6 = vrot.slane %v206_v5, 4  ;;  %s601_s15 = smov [#allocation5]  }
  0x3f   : > { %p515_p11 = pnand %p514_p8, %p818_p9  ;;  %s517_s4 = sshll.u32 %s601_s15, 4  ;;  %s518_s4 = int_to_ptr.vmem [resolvable:$false] %s517_s4 }
  0x40   : > { %v208_v7 = vadd.f32 %v207_v6, %v206_v5  ;;  %s519_s7 = scalar_lea.vmem %s518_s4, 256  ;;  %p520_p7 = scmp.lt.s32.totalorder %s758_s21, %s518_s4 }
  0x41   : > { %p516_p0 = pneg %p515_p11  ;;  %p521_p13 = scmp.lt.s32.totalorder %s519_s7, %s513_s30 }
  0x42   : > { %v209_v8 = vrot.slane %v208_v7, 2 }
  0x43   : > { %p522_p3 = por %p521_p13, %p520_p7 }
  0x44   : > { %v210_v9 = vadd.f32 %v209_v8, %v208_v7 }
  0x45   : > { %p523_p6 = pnand %p522_p3, %p516_p0 }
  0x46   : > { %v211_v10 = vrot.slane %v210_v9, 1 }
  0x48   : > { %v212_v11 = vadd.f32 %v211_v10, %v210_v9 }
  0x4a   : > { %v213_v12 = vmax.f32 %v212_v11, 1e-24 }
  0x4c   : > { %481 = vrsqrt.f32 %v213_v12 }
  0x56   : > { %v482_v13 = vpop.eup %481 }
  0x57   : > { %v215_v14 = vmul.f32 %v482_v13, %v203_v3 }
  0xba   : > { %v220_v15 = vpop.permute.xlu0 %219 }
  0xbb   : > { %v222_v16 = vmul.f32 %v220_v15, %v215_v14 }
  0xbd   : > { %411 = vmatpush3.msra.mxu0 %v222_v16 }
  0xbe   : > { %413 = vmatmul.mubr.msk.f32.vlgmr.msra.gmra.mrb[0].mxu0 %vm224_vm2, %v223_v17 }
 0x191   : > { %v294_v18 = vpop.f32.mrb[0].mxu0 }
 0x192   : > { %298 = vst.msk [vmem:[%s202_s19] sm:$0xff] %vm205_vm1, %v294_v18  ;;  %v414_v19 = vpop.f32.mrb[1].mxu0 }
 0x193   : > { %526 = shalt.err (!%p523_p6)
}
 0x194   : > { %s527_s5 = scalar_lea.hbm %s756_s28, 128  ;;  %s531_s6 = scalar_lea.hbm %s809_s3, 256 }
 0x195   : > { %p528_p4 = scmp.ne.s32.totalorder %s756_s28, %s527_s5  ;;  %p532_p1 = scmp.lt.u32.totalorder %s756_s28, %s809_s3 }
 0x196   : > { %p533_p2 = scmp.lt.u32.totalorder %s531_s6, %s527_s5  ;;  %p535_p8 = scmp.lt.u32.totalorder %s527_s5, %s756_s28 }
 0x197   : > { %p529_p10 = pnand %p528_p4, %p818_p9 }
 0x198   : > { %p534_p5 = por %p533_p2, %p532_p1 }
 0x199   : > { %p530_p12 = pneg %p529_p10 }
 0x19a   : > { %p536_p11 = por %p535_p8, %p534_p5 }
 0x19c   : > { %p537_p0 = pnand %p536_p11, %p530_p12 }
 0x19e   : > { %540 = shalt.err (!%p537_p0)
}
 0x19f   : > { %417 = dma.vmem_to_hbm [thread:$0]  (%p818_p9), %s758_s21, 128, %s756_s28, %s300_s29  }
 0x1a0 PF: > { %s326_s10 = sand.u32 1, %s575_s12   ;;  %p819_p7 = scmp.ne.s32.totalorder %s814_s27, 0 }
 0x1a1   : > { %p820_p13 = scmp.ge.s32.totalorder %s595_s17, 2  ;;  %s327_s18 = scalar_lea.sflag [#allocation4], %s326_s10 }
 0x1a3   : > { %p424_p3 = pnand %p820_p13, %p819_p7 }
 0x1a5   : > { %570 = dma.done.wait (!%p424_p3), %s327_s18, 128  }
 0x1a6   : > { %572 = vsyncadd (!%p424_p3), %s327_s18, 4294967168  ;;  %s19_s17 = sadd.s32 1, %s595_s17   ;;  %s821_s12 = smov %s579_s13 }
 0x1a7   : > { %p16_p6 = scmp.ge.s32.totalorder %s19_s17, 4   ;;  %s822_s13 = smov %s583_s14 }
 0x1a8   : > { %s823_s14 = smov %s678_s26  ;;  %s824_s15 = smov %s591_s16 }
 0x1a9   : > { %s825_s16 = smov %s827_s20  ;;  %18 = sbr.rel (!%p16_p6) target bundleno = 6 (0x6), region = 77 }
 0x1b0   :  { %332 = vsyncpa [#allocation3], 1 }
 0x1b1   :  { %334 = vsyncpa [#allocation3 + $0x1], 1 }
 0x1b2   :  { %335 = vsyncpa [#allocation4], 1 }
 0x1b3   :  { %337 = vsyncpa [#allocation4 + $0x1], 1 }

</bundles_post_ra>
